<compile_context>
chip_gen: v5e
topology: v5e:2x2
jax: 0.10.0
libtpu: 0.0.40
codegen_flags: <defaults>
</compile_context>

<pallas_src>
import jax
import jax.numpy as jnp
from jax.experimental import pallas as pl
from jax.experimental.pallas import tpu as pltpu

STATE_DIM = 3
INPUT_DIM = 3
OUT_DIM = 3
H1 = 64                          # state_net / input_net width (= layer_2 out width)
H = 128                          # fused hidden width (= 2*H1 = layer_1 width)
SI_DIM = STATE_DIM + INPUT_DIM   # 6
XT_ROWS = 8                      # padded (state,input)^T rows
OUT_ROWS = 8                     # padded output^T rows (sublane group)
LANE = 128


# ----------------------------------------------------------------------------- kernel
def rnn_kernel(xT_ref,                     # (8, bt)    bf16 : rows 0-2 state^T, 3-5 input^T, 6-7 zero
               wsiT_ref, bsiT_ref,         # (128, 8)   bf16 block-diag^T, (128, 1) f32
               w1T_ref, b1T_ref,           # (128, 128) bf16,              (128, 1) f32
               w2T_ref, b2T_ref,           # (64, 128)  bf16,              (64, 1)  f32
               w3T_ref, b3T_ref,           # (8, 64)    bf16 (M padded),   (8, 1)   f32
               oT_ref):                    # (8, bt)    f32 : rows 0-2 output^T, rows 3-7 exact zeros
    # fused state/input branch: relu(blockdiag(Ws,Wi)^T @ [s;x]^T + [bs;bi]^T)
    h0 = jnp.maximum(
        jnp.dot(wsiT_ref[...], xT_ref[...], preferred_element_type=jnp.float32)
        + bsiT_ref[...], 0.0).astype(jnp.bfloat16)                      # (128, bt)
    # layer_1
    h1 = jnp.maximum(
        jnp.dot(w1T_ref[...], h0, preferred_element_type=jnp.float32)
        + b1T_ref[...], 0.0).astype(jnp.bfloat16)                       # (128, bt)
    # layer_2 (true 64-wide; no dead padding work)
    h2 = jnp.maximum(
        jnp.dot(w2T_ref[...], h1, preferred_element_type=jnp.float32)
        + b2T_ref[...], 0.0).astype(jnp.bfloat16)                       # (64, bt)
    # layer_3 (M zero-padded 3 -> 8) -> lane-dense unmasked (8, bt) f32 store
    oT_ref[...] = jnp.tanh(
        jnp.dot(w3T_ref[...], h2, preferred_element_type=jnp.float32)
        + b3T_ref[...])


# ----------------------------------------------------------------------------- wrapper
def _round_up(x, m):
    return ((x + m - 1) // m) * m


def _pick_batch_tile(B, requested):
    """Lane-axis batch tile: multiple of 128, prefer >= 2 (ideally even) grid steps."""
    bt = max(LANE, (min(requested, B) // LANE) * LANE)
    n = pl.cdiv(B, bt)
    if n < 2 and B > LANE:
        # split so the "parallel" grid axis can shard across v7x's 2 TensorCores
        bt = max(LANE, _round_up(pl.cdiv(B, 2), LANE))
        n = pl.cdiv(B, bt)
    if n > 2 and n % 2 == 1:
        bt2 = max(LANE, _round_up(pl.cdiv(B, n + 1), LANE))
        if pl.cdiv(B, bt2) % 2 == 0:
            bt = bt2
    return bt


def rnn_net_forward(state, inp, prepared, *, batch_tile=4096):
    """state: (B, 3) f32, inp: (B, 3) f32 -> (B, 3) f32."""
    (wsiT, bsiT, w1T, b1T, w2T, b2T, w3T, b3T) = prepared
    B = state.shape[0]
    bt = _pick_batch_tile(B, batch_tile)
    n_tiles = pl.cdiv(B, bt)
    B_pad = n_tiles * bt

    # single streamed, transposed input: (8, B_pad) bf16 (rows 6..7 and cols B.. zero)
    x = jnp.concatenate([state, inp], axis=1).astype(jnp.bfloat16)       # (B, 6)
    xT = jnp.zeros((XT_ROWS, B_pad), jnp.bfloat16).at[:SI_DIM, :B].set(x.T)

    def const(a):
        # constant (grid-invariant) block: full-array view, index_map always (0, 0)
        return pl.BlockSpec(a.shape, lambda i: (0, 0))

    in_specs = [
        pl.BlockSpec((XT_ROWS, bt), lambda i: (0, i)),
        const(wsiT), const(bsiT),
        const(w1T), const(b1T),
        const(w2T), const(b2T),
        const(w3T), const(b3T),
    ]
    out_spec = pl.BlockSpec((OUT_ROWS, bt), lambda i: (0, i))

    weight_bytes = sum(int(a.size) * a.dtype.itemsize for a in prepared)
    cost = pl.CostEstimate(
        flops=2 * B_pad * (XT_ROWS * H + H * H + H * H1 + H1 * OUT_ROWS),
        transcendentals=B_pad * OUT_ROWS,
        bytes_accessed=int(xT.size) * xT.dtype.itemsize
        + OUT_ROWS * B_pad * 4 + weight_bytes,
    )

    outT = pl.pallas_call(
        rnn_kernel,
        out_shape=jax.ShapeDtypeStruct((OUT_ROWS, B_pad), jnp.float32),
        grid=(n_tiles,),
        in_specs=in_specs,
        out_specs=out_spec,
        compiler_params=pltpu.CompilerParams(
            dimension_semantics=("parallel",),
            vmem_limit_bytes=32 * 1024 * 1024),
        cost_estimate=cost,
    )(xT, wsiT, bsiT, w1T, b1T, w2T, b2T, w3T, b3T)

    # tiny (3, B) slice + transpose (output slab already 16x smaller than before)
    return outT[:OUT_DIM, :B].T


# ----------------------------------------------------------------------------- params
def init_params(key):
    """Torch-style nn.Linear init (uniform +-1/sqrt(fan_in)); weights as (in, out)."""
    def linear(key, fan_in, fan_out):
        kw, kb = jax.random.split(key)
        bound = 1.0 / jnp.sqrt(fan_in)
        w = jax.random.uniform(kw, (fan_in, fan_out), jnp.float32, -bound, bound)
        b = jax.random.uniform(kb, (1, fan_out), jnp.float32, -bound, bound)
        return w, b

    keys = jax.random.split(key, 5)
    ws, bs = linear(keys[0], STATE_DIM, H1)     # state_net
    wi, bi = linear(keys[1], INPUT_DIM, H1)     # input_net
    w1, b1 = linear(keys[2], 2 * H1, H)         # layer_1
    w2, b2 = linear(keys[3], H, H1)             # layer_2 (128 -> 64)
    w3, b3 = linear(keys[4], H1, OUT_DIM)       # layer_3 (64 -> 3)
    return (ws, bs, wi, bi, w1, b1, w2, b2, w3, b3)


def prepare_params(raw):
    """Transpose all weights for the (features, batch) dataflow, fuse state/input
    nets into one block-diagonal first matmul, zero-pad only layer 3's tiny rows,
    and cast weights to bf16 (biases stay f32 column vectors)."""
    (ws, bs, wi, bi, w1, b1, w2, b2, w3, b3) = raw
    bf = jnp.bfloat16

    wsiT = jnp.zeros((H, XT_ROWS), jnp.float32)
    wsiT = wsiT.at[:H1, :STATE_DIM].set(ws.T)               # state branch rows 0..63
    wsiT = wsiT.at[H1:, STATE_DIM:SI_DIM].set(wi.T)         # input branch rows 64..127
    bsiT = jnp.concatenate([bs, bi], axis=1).T               # (128, 1)

    w1T, b1T = w1.T, b1.T                                     # (128, 128), (128, 1)
    w2T, b2T = w2.T, b2.T                                     # (64, 128),  (64, 1)
    w3T = jnp.zeros((OUT_ROWS, H1), jnp.float32).at[:OUT_DIM, :].set(w3.T)   # (8, 64)
    b3T = jnp.zeros((OUT_ROWS, 1), jnp.float32).at[:OUT_DIM, :].set(b3.T)    # (8, 1)

    return (wsiT.astype(bf), bsiT, w1T.astype(bf), b1T,
            w2T.astype(bf), b2T, w3T.astype(bf), b3T)


# ----------------------------------------------------------------------------- refs
def reference_bf16(state, inp, prepared):
    """Same mixed-precision, same-orientation math the kernel does."""
    (wsiT, bsiT, w1T, b1T, w2T, b2T, w3T, b3T) = prepared
    B = state.shape[0]
    x = jnp.concatenate([state, inp], axis=1).astype(jnp.bfloat16)
    xT = jnp.zeros((XT_ROWS, B), jnp.bfloat16).at[:SI_DIM, :].set(x.T)
    h0 = jnp.maximum(jnp.dot(wsiT, xT, preferred_element_type=jnp.float32)
                     + bsiT, 0.0).astype(jnp.bfloat16)
    h1 = jnp.maximum(jnp.dot(w1T, h0, preferred_element_type=jnp.float32)
                     + b1T, 0.0).astype(jnp.bfloat16)
    h2 = jnp.maximum(jnp.dot(w2T, h1, preferred_element_type=jnp.float32)
                     + b2T, 0.0).astype(jnp.bfloat16)
    outT = jnp.tanh(jnp.dot(w3T, h2, preferred_element_type=jnp.float32) + b3T)
    return outT[:OUT_DIM, :].T


def reference_f32(state, inp, raw):
    """Original torch-module semantics in f32."""
    (ws, bs, wi, bi, w1, b1, w2, b2, w3, b3) = raw
    h_s = jax.nn.relu(state @ ws + bs)
    h_i = jax.nn.relu(inp @ wi + bi)
    h_all = jnp.concatenate([h_s, h_i], axis=1)
    h1 = jax.nn.relu(h_all @ w1 + b1)
    h2 = jax.nn.relu(h1 @ w2 + b2)
    return jnp.tanh(h2 @ w3 + b3)


# ----------------------------------------------------------------------------- main
if __name__ == "__main__":
    key = jax.random.PRNGKey(0)
    kp, ks, ki = jax.random.split(key, 3)

    raw_params = init_params(kp)
    prepared = prepare_params(raw_params)

    # main case: enough rows for a 2-step "parallel" grid (256-lane batch tiles)
    B = 512
    train_state_data = jax.random.normal(ks, (B, STATE_DIM), jnp.float32)
    train_input_data = jax.random.normal(ki, (B, INPUT_DIM), jnp.float32)

    out = rnn_net_forward(train_state_data, train_input_data, prepared)
    out = jax.block_until_ready(out)
    assert out.shape == (B, OUT_DIM)

    # exact-path check (same bf16/f32-accum math and orientation as the kernel)
    ref_bf = reference_bf16(train_state_data, train_input_data, prepared)
    assert jnp.allclose(out, ref_bf, atol=2e-3, rtol=2e-3)

    # semantic check against the original f32 module (bf16 quantization slack)
    ref_f32 = reference_f32(train_state_data, train_input_data, raw_params)
    assert jnp.allclose(out, ref_f32, atol=5e-2, rtol=5e-2)

    # ragged case: exercises batch padding (B=100 -> one 128-lane tile)
    B2 = 100
    s2 = jax.random.normal(jax.random.PRNGKey(1), (B2, STATE_DIM), jnp.float32)
    i2 = jax.random.normal(jax.random.PRNGKey(2), (B2, INPUT_DIM), jnp.float32)
    out2 = jax.block_until_ready(rnn_net_forward(s2, i2, prepared))
    assert out2.shape == (B2, OUT_DIM)
    assert jnp.allclose(out2, reference_bf16(s2, i2, prepared), atol=2e-3, rtol=2e-3)
    assert jnp.allclose(out2, reference_f32(s2, i2, raw_params), atol=5e-2, rtol=5e-2)

    print("KERNEL_OK")
</pallas_src>

<mosaic_0001>
module attributes {stable_mosaic.version = 11 : i64} {
  func.func @rnn_kernel(%arg0: i32, %arg1: memref<8x256xbf16, #tpu.memory_space<vmem>>, %arg2: memref<128x8xbf16, #tpu.memory_space<vmem>>, %arg3: memref<128x1xf32, #tpu.memory_space<vmem>>, %arg4: memref<128x128xbf16, #tpu.memory_space<vmem>>, %arg5: memref<128x1xf32, #tpu.memory_space<vmem>>, %arg6: memref<64x128xbf16, #tpu.memory_space<vmem>>, %arg7: memref<64x1xf32, #tpu.memory_space<vmem>>, %arg8: memref<8x64xbf16, #tpu.memory_space<vmem>>, %arg9: memref<8x1xf32, #tpu.memory_space<vmem>>, %arg10: memref<8x256xf32, #tpu.memory_space<vmem>>) attributes {dimension_semantics = [#tpu.dimension_semantics<parallel>], iteration_bounds = array<i64: 2>, scalar_prefetch = 0 : i64, scratch_operands = 0 : i64, tpu.core_type = #tpu.core_type<tc>, window_params = [{transform_indices = @transform_0, window_bounds = array<i64: 8, 256>}, {pipeline_mode = #tpu.pipeline_mode<synchronous>, transform_indices = @transform_1, window_bounds = array<i64: 128, 8>}, {pipeline_mode = #tpu.pipeline_mode<synchronous>, transform_indices = @transform_2, window_bounds = array<i64: 128, 1>}, {pipeline_mode = #tpu.pipeline_mode<synchronous>, transform_indices = @transform_3, window_bounds = array<i64: 128, 128>}, {pipeline_mode = #tpu.pipeline_mode<synchronous>, transform_indices = @transform_4, window_bounds = array<i64: 128, 1>}, {pipeline_mode = #tpu.pipeline_mode<synchronous>, transform_indices = @transform_5, window_bounds = array<i64: 64, 128>}, {pipeline_mode = #tpu.pipeline_mode<synchronous>, transform_indices = @transform_6, window_bounds = array<i64: 64, 1>}, {pipeline_mode = #tpu.pipeline_mode<synchronous>, transform_indices = @transform_7, window_bounds = array<i64: 8, 64>}, {pipeline_mode = #tpu.pipeline_mode<synchronous>, transform_indices = @transform_8, window_bounds = array<i64: 8, 1>}, {transform_indices = @transform_9, window_bounds = array<i64: 8, 256>}]} {
    %c0 = arith.constant 0 : index
    %c0_0 = arith.constant 0 : index
    %0 = vector.load %arg2[%c0, %c0_0] : memref<128x8xbf16, #tpu.memory_space<vmem>>, vector<128x8xbf16>
    %c0_1 = arith.constant 0 : index
    %c0_2 = arith.constant 0 : index
    %1 = vector.load %arg1[%c0_1, %c0_2] : memref<8x256xbf16, #tpu.memory_space<vmem>>, vector<8x256xbf16>
    %cst = arith.constant dense<0.000000e+00> : vector<128x256xf32>
    %2 = tpu.matmul %0, %1, %cst {dimension_numbers = #tpu.dot_dimension_numbers<[1], [0], [0], [1], [0, 0, 1, 1], [], []>} : vector<128x8xbf16>, vector<8x256xbf16>, vector<128x256xf32> -> vector<128x256xf32>
    %c0_3 = arith.constant 0 : index
    %c0_4 = arith.constant 0 : index
    %3 = vector.load %arg3[%c0_3, %c0_4] : memref<128x1xf32, #tpu.memory_space<vmem>>, vector<128x1xf32>
    %4 = vector.broadcast %3 : vector<128x1xf32> to vector<128x256xf32>
    %5 = arith.addf %2, %4 : vector<128x256xf32>
    %cst_5 = arith.constant 0.000000e+00 : f32
    %6 = vector.broadcast %cst_5 : f32 to vector<128x256xf32>
    %7 = arith.maximumf %5, %6 : vector<128x256xf32>
    %8 = arith.truncf %7 : vector<128x256xf32> to vector<128x256xbf16>
    %c0_6 = arith.constant 0 : index
    %c0_7 = arith.constant 0 : index
    %9 = vector.load %arg4[%c0_6, %c0_7] : memref<128x128xbf16, #tpu.memory_space<vmem>>, vector<128x128xbf16>
    %cst_8 = arith.constant dense<0.000000e+00> : vector<128x256xf32>
    %10 = tpu.matmul %9, %8, %cst_8 {dimension_numbers = #tpu.dot_dimension_numbers<[1], [0], [0], [1], [0, 0, 1, 1], [], []>} : vector<128x128xbf16>, vector<128x256xbf16>, vector<128x256xf32> -> vector<128x256xf32>
    %c0_9 = arith.constant 0 : index
    %c0_10 = arith.constant 0 : index
    %11 = vector.load %arg5[%c0_9, %c0_10] : memref<128x1xf32, #tpu.memory_space<vmem>>, vector<128x1xf32>
    %12 = vector.broadcast %11 : vector<128x1xf32> to vector<128x256xf32>
    %13 = arith.addf %10, %12 : vector<128x256xf32>
    %cst_11 = arith.constant 0.000000e+00 : f32
    %14 = vector.broadcast %cst_11 : f32 to vector<128x256xf32>
    %15 = arith.maximumf %13, %14 : vector<128x256xf32>
    %16 = arith.truncf %15 : vector<128x256xf32> to vector<128x256xbf16>
    %c0_12 = arith.constant 0 : index
    %c0_13 = arith.constant 0 : index
    %17 = vector.load %arg6[%c0_12, %c0_13] : memref<64x128xbf16, #tpu.memory_space<vmem>>, vector<64x128xbf16>
    %cst_14 = arith.constant dense<0.000000e+00> : vector<64x256xf32>
    %18 = tpu.matmul %17, %16, %cst_14 {dimension_numbers = #tpu.dot_dimension_numbers<[1], [0], [0], [1], [0, 0, 1, 1], [], []>} : vector<64x128xbf16>, vector<128x256xbf16>, vector<64x256xf32> -> vector<64x256xf32>
    %c0_15 = arith.constant 0 : index
    %c0_16 = arith.constant 0 : index
    %19 = vector.load %arg7[%c0_15, %c0_16] : memref<64x1xf32, #tpu.memory_space<vmem>>, vector<64x1xf32>
    %20 = vector.broadcast %19 : vector<64x1xf32> to vector<64x256xf32>
    %21 = arith.addf %18, %20 : vector<64x256xf32>
    %cst_17 = arith.constant 0.000000e+00 : f32
    %22 = vector.broadcast %cst_17 : f32 to vector<64x256xf32>
    %23 = arith.maximumf %21, %22 : vector<64x256xf32>
    %24 = arith.truncf %23 : vector<64x256xf32> to vector<64x256xbf16>
    %c0_18 = arith.constant 0 : index
    %c0_19 = arith.constant 0 : index
    %25 = vector.load %arg8[%c0_18, %c0_19] : memref<8x64xbf16, #tpu.memory_space<vmem>>, vector<8x64xbf16>
    %cst_20 = arith.constant dense<0.000000e+00> : vector<8x256xf32>
    %26 = tpu.matmul %25, %24, %cst_20 {dimension_numbers = #tpu.dot_dimension_numbers<[1], [0], [0], [1], [0, 0, 1, 1], [], []>} : vector<8x64xbf16>, vector<64x256xbf16>, vector<8x256xf32> -> vector<8x256xf32>
    %c0_21 = arith.constant 0 : index
    %c0_22 = arith.constant 0 : index
    %27 = vector.load %arg9[%c0_21, %c0_22] : memref<8x1xf32, #tpu.memory_space<vmem>>, vector<8x1xf32>
    %28 = vector.broadcast %27 : vector<8x1xf32> to vector<8x256xf32>
    %29 = arith.addf %26, %28 : vector<8x256xf32>
    %30 = math.tanh %29 : vector<8x256xf32>
    %c0_23 = arith.constant 0 : index
    %c0_24 = arith.constant 0 : index
    %31 = vector.load %arg10[%c0_23, %c0_24] : memref<8x256xf32, #tpu.memory_space<vmem>>, vector<8x256xf32>
    tpu.vector_store %arg10[%c0_23, %c0_24], %30 {strides = array<i32>} : memref<8x256xf32, #tpu.memory_space<vmem>>, vector<8x256xf32>,
    return
  }
  func.func @transform_0(%arg0: i32) -> (i32, i32) {
    %c0_i32 = arith.constant 0 : i32
    %c0_i32_0 = arith.constant 0 : i32
    return %c0_i32, %arg0 : i32, i32
  }
  func.func @transform_1(%arg0: i32) -> (i32, i32) {
    %c0_i32 = arith.constant 0 : i32
    %c0_i32_0 = arith.constant 0 : i32
    %c0_i32_1 = arith.constant 0 : i32
    return %c0_i32, %c0_i32_0 : i32, i32
  }
  func.func @transform_2(%arg0: i32) -> (i32, i32) {
    %c0_i32 = arith.constant 0 : i32
    %c0_i32_0 = arith.constant 0 : i32
    %c0_i32_1 = arith.constant 0 : i32
    return %c0_i32, %c0_i32_0 : i32, i32
  }
  func.func @transform_3(%arg0: i32) -> (i32, i32) {
    %c0_i32 = arith.constant 0 : i32
    %c0_i32_0 = arith.constant 0 : i32
    %c0_i32_1 = arith.constant 0 : i32
    return %c0_i32, %c0_i32_0 : i32, i32
  }
  func.func @transform_4(%arg0: i32) -> (i32, i32) {
    %c0_i32 = arith.constant 0 : i32
    %c0_i32_0 = arith.constant 0 : i32
    %c0_i32_1 = arith.constant 0 : i32
    return %c0_i32, %c0_i32_0 : i32, i32
  }
  func.func @transform_5(%arg0: i32) -> (i32, i32) {
    %c0_i32 = arith.constant 0 : i32
    %c0_i32_0 = arith.constant 0 : i32
    %c0_i32_1 = arith.constant 0 : i32
    return %c0_i32, %c0_i32_0 : i32, i32
  }
  func.func @transform_6(%arg0: i32) -> (i32, i32) {
    %c0_i32 = arith.constant 0 : i32
    %c0_i32_0 = arith.constant 0 : i32
    %c0_i32_1 = arith.constant 0 : i32
    return %c0_i32, %c0_i32_0 : i32, i32
  }
  func.func @transform_7(%arg0: i32) -> (i32, i32) {
    %c0_i32 = arith.constant 0 : i32
    %c0_i32_0 = arith.constant 0 : i32
    %c0_i32_1 = arith.constant 0 : i32
    return %c0_i32, %c0_i32_0 : i32, i32
  }
  func.func @transform_8(%arg0: i32) -> (i32, i32) {
    %c0_i32 = arith.constant 0 : i32
    %c0_i32_0 = arith.constant 0 : i32
    %c0_i32_1 = arith.constant 0 : i32
    return %c0_i32, %c0_i32_0 : i32, i32
  }
  func.func @transform_9(%arg0: i32) -> (i32, i32) {
    %c0_i32 = arith.constant 0 : i32
    %c0_i32_0 = arith.constant 0 : i32
    return %c0_i32, %arg0 : i32, i32
  }
}

</mosaic_0001>

<bundles_post_ra>
// kernel: tpu_custom_call.1
= control target key start
LH: loop header
LB: loop body
LE: loop exit
PB: predicated region body
PF: predicated region fallthrough
CT: control target
= control target key end

     0   :  { %14 = vsyncpa [#allocation3], 0  ;;  %s1947_s0 = inlined_call_operand.vmem [shape: bf16[8,512], index: 0, kind: input, shape index: {}]   ;;  %s1948_s1 = inlined_call_operand.vmem [shape: bf16[128,8], index: 1, kind: input, shape index: {}]   ;;  %s1949_s2 = inlined_call_operand.vmem [shape: f32[128,1], index: 2, kind: input, shape index: {}]   ;;  %s1950_s3 = inlined_call_operand.vmem [shape: bf16[128,128], index: 3, kind: input, shape index: {}]   ;;  %s1951_s4 = inlined_call_operand.vmem [shape: f32[128,1], index: 4, kind: input, shape index: {}]   ;;  %s1952_s5 = inlined_call_operand.vmem [shape: bf16[64,128], index: 5, kind: input, shape index: {}]   ;;  %s1953_s6 = inlined_call_operand.vmem [shape: f32[64,1], index: 6, kind: input, shape index: {}]   ;;  %s1954_s7 = inlined_call_operand.vmem [shape: bf16[8,64], index: 7, kind: input, shape index: {}]   ;;  %s1955_s8 = inlined_call_operand.vmem [shape: f32[8,1], index: 8, kind: input, shape index: {}]   ;;  %s1956_s9 = inlined_call_operand.hbm [shape: f32[8,512], index: 9, kind: output, shape index: {}]  }
   0x1   :  { %16 = vsyncpa [#allocation3 + $0x1], 0  ;;  %s1549_s30 = smov 0   ;;  %s1551_s10 = smov 0  }
   0x2   :  { %s1553_s11 = smov 0   ;;  %s1555_s12 = smov 0  }
   0x3 LB: > { %s1570_s13 = sadd.s32 4294967295, %s1496_s12   ;;  %s1256_s14 = sadd.s32 4294967294, %s1496_s12   ;;  %s1496_s12 = sphi %s1555_s12, %s1962_s12   ;;  %s1492_s11 = sphi %s1553_s11, %s1961_s11   ;;  %s1488_s10 = sphi %s1551_s10, %s1960_s10   ;;  %s1484_s30 = sphi %s1549_s30, %s1959_s30  }
   0x4   : > { %s1574_s15 = sadd.s32 1, %s1496_s12   ;;  %s223_s16 = sadd.s32 1, %s1492_s11 }
   0x5   : > { %s220_s17 = ssub.s32 %s1496_s12, %s1574_s15  ;;  %p233_p0 = scmp.ne.s32.totalorder %s1492_s11, %s1488_s10 }
   0x6   : > { %p221_p1 = scmp.eq.s32.totalorder %s220_s17, 0  ;;  %p234_p2 = scmp.eq.s32.totalorder %s1570_s13, 1 }
   0x7   : > { %p239_p3 = scmp.ne.s32.totalorder %s1488_s10, %s1484_s30  ;;  %p240_p4 = scmp.eq.s32.totalorder %s1256_s14, 1 }
   0x8   : > { %s1585_s18 = scalar_select %p221_p1, %s1492_s11, %s223_s16  }
   0x9   : > { %p1587_p5 = por %p234_p2, %p233_p0  ;;  %p1591_p6 = por %p240_p4, %p239_p3 }
   0xa   : > { %p1259_p7 = scmp.ge.s32.totalorder %s1496_s12, 1  ;;  %p291_p8 = scmp.lt.s32.totalorder %s1496_s12, 3 }
   0xc   : > { %p292_p9 = pnand %p1259_p7, %p291_p8 }
   0xd   : > { %s1261_s23 = sshll.u32 (!%p292_p9), %s1570_s13, 1  ;;  %s324_s14 = sand.u32 (!%p292_p9), 1, %s1488_s10  }
   0xe   : > { %295 = sbr.rel (%p292_p9) target bundleno = 951 (0x3b7), region = 56  ;;  %p328_p10 = scmp.lt.s32.totalorder (!%p292_p9), %s1261_s23, 3 }
   0xf   : > { %s1386_s17 = sshll.u32 (!%p292_p9), %s1570_s13, 4  ;;  %s1181_s13 = scalar_lea.sflag (!%p292_p9), [#allocation3], %s324_s14 }
  0x10   : > { %s1192_s24 = scalar_lea.hbm (!%p292_p9), %s1956_s9, %s1386_s17  ;;  %s1454_s17 = scalar_lea.hbm (!%p292_p9), %s1956_s9, 32 }
  0x13   : > { %v366_v0 = vld [vmem:[%s1949_s2 + $0x70] sm:$0xff]  ;;  %v1498_v1 = vmov 0   ;;  %v364_v2 = vld [vmem:[%s1949_s2 + $0x60] sm:$0xff]  ;;  %s1964_s23 = smov (!%p328_p10, %s1261_s23), 3  ;;  %v367_v4 = vld [vmem:[%s1949_s2 + $0x78] sm:$0xff]  ;;  %vm518_vm0 = vcmask 1043456  }
  0x14   : > { %1427 = vset.pattern.permute.xlu0 %v1498_v1  ;;  %1429 = vset.pattern.permute.xlu2 %v1498_v1  ;;  %v362_v3 = vld [vmem:[%s1949_s2 + $0x50] sm:$0xff]  ;;  %s1262_s28 = sshll.u32 %s1964_s23, 2  ;;  %v365_v8 = vld [vmem:[%s1949_s2 + $0x68] sm:$0xff]  ;;  %v363_v9 = vld [vmem:[%s1949_s2 + $0x58] sm:$0xff]  ;;  %vm493_vm1 = vcmask 64512   ;;  %vm1146_vm2 = vcmask 523264  }
  0x15   : > { %440 = vperm.xlu0 %1427, %v366_v0   ;;  %1428 = vset.pattern.permute.xlu1 %v1498_v1  ;;  %s331_s16 = scalar_lea.vmem %s1947_s0, %s1262_s28  ;;  %v1366_v14 = vld [vmem:[%s1948_s1] sm:$0xff]  ;;  %v361_v16 = vld [vmem:[%s1949_s2 + $0x48] sm:$0xff]  ;;  %v358_v17 = vld [vmem:[%s1949_s2 + $0x30] sm:$0xff]  ;;  %s1196_s23 = sshll.u32 %s1192_s24, 4  ;;  %s1197_s23 = int_to_ptr.hbm [resolvable:$true] %s1196_s23 }
  0x16   : > { %430 = vperm.xlu1 %1428, %v364_v2   ;;  %420 = vperm.xlu2 %1429, %v362_v3   ;;  %v351_v5 = vld [vmem:[%s331_s16] sm:$0xff]  ;;  %v359_v18 = vld [vmem:[%s1949_s2 + $0x38] sm:$0xff]  ;;  %v357_v19 = vld [vmem:[%s1949_s2 + $0x28] sm:$0xff]  ;;  %s1260_s16 = sshll.u32 %s324_s14, 4  ;;  %s1448_s27 = sshra.s32 %s1197_s23, 4  ;;  %s1449_s27 = int_to_ptr.hbm [resolvable:$true] %s1448_s27 }
  0x17   : > { %v489_v6 = vunpack.c.l.b16 %v351_v5  ;;  %v490_v7 = vunpack.c.h.b16 %v351_v5  ;;  %v360_v15 = vld [vmem:[%s1949_s2 + $0x40] sm:$0xff]  ;;  %v1367_v21 = vld [vmem:[%s1948_s1 + $0x8] sm:$0xff]  ;;  %v354_v22 = vld [vmem:[%s1949_s2 + $0x10] sm:$0xff]  ;;  %s326_s25 = scalar_lea.vmem [#allocation2], %s1260_s16  ;;  %s1450_s28 = scalar_lea.hbm %s1449_s27, 16 }
  0x18   : > { %v356_v20 = vld [vmem:[%s1949_s2 + $0x20] sm:$0xff]  ;;  %v355_v23 = vld [vmem:[%s1949_s2 + $0x18] sm:$0xff]  ;;  %v353_v25 = vld [vmem:[%s1949_s2 + $0x8] sm:$0xff]  ;;  %s1194_s26 = sshll.u32 %s326_s25, 4  ;;  %p1451_p11 = scmp.ne.s32.totalorder %s1449_s27, %s1450_s28  ;;  %s1195_s26 = int_to_ptr.vmem [resolvable:$true] %s1194_s26 }
  0x19   : > { %v491_v10 = vpack.c.b16 %v489_v6, %v489_v6  ;;  %v492_v11 = vpack.c.b16 %v490_v7, %v490_v7  ;;  %v352_v24 = vld [vmem:[%s1949_s2] sm:$0xff]  ;;  %v701_v26 = vld [vmem:[%s1951_s4 + $0x70] sm:$0xff]  ;;  %v700_v29 = vld [vmem:[%s1951_s4 + $0x68] sm:$0xff]  ;;  %p1455_p0 = scmp.lt.s32.totalorder %s1449_s27, %s1956_s9  ;;  %p1456_p1 = scmp.lt.s32.totalorder %s1454_s17, %s1450_s28 }
  0x1a   : > { %v1368_v27 = vld [vmem:[%s1948_s1 + $0x10] sm:$0xff]  ;;  %v699_v28 = vld [vmem:[%s1951_s4 + $0x60] sm:$0xff]  ;;  %v698_v30 = vld [vmem:[%s1951_s4 + $0x58] sm:$0xff]  ;;  %p1452_p12 = pnand %p1451_p11, %p1587_p5 }
  0x1b   : > { %v520_v12 = vsel %vm518_vm0, %v491_v10, 0  ;;  %v523_v13 = vsel %vm518_vm0, %v492_v11, 0  ;;  %v695_v31 = vld [vmem:[%s1951_s4 + $0x40] sm:$0xff]  ;;  %v1369_v32 = vld [vmem:[%s1948_s1 + $0x18] sm:$0xff]  ;;  %v693_v33 = vld [vmem:[%s1951_s4 + $0x30] sm:$0xff]  ;;  %p1457_p2 = por %p1456_p1, %p1455_p0 }
  0x1c   : > { %532 = vmatpush.bf16.msra.mxu0 %v520_v12  ;;  %581 = vmatpush.bf16.msra.mxu1 %v523_v13  ;;  %v694_v34 = vld [vmem:[%s1951_s4 + $0x38] sm:$0xff]  ;;  %v692_v36 = vld [vmem:[%s1951_s4 + $0x28] sm:$0xff]  ;;  %v689_v37 = vld [vmem:[%s1951_s4 + $0x10] sm:$0xff]  ;;  %p1453_p13 = pneg %p1452_p12 }
  0x1d   : > { %445 = vperm.xlu0 %1427, %v367_v4   ;;  %v702_v35 = vld [vmem:[%s1951_s4 + $0x78] sm:$0xff]  ;;  %v1370_v38 = vld [vmem:[%s1948_s1 + $0x20] sm:$0xff]  ;;  %v688_v40 = vld [vmem:[%s1951_s4 + $0x8] sm:$0xff] }
  0x1e   : > { %435 = vperm.xlu1 %1428, %v365_v8   ;;  %425 = vperm.xlu2 %1429, %v363_v9   ;;  %v687_v39 = vld [vmem:[%s1951_s4] sm:$0xff]  ;;  %v697_v41 = vld [vmem:[%s1951_s4 + $0x50] sm:$0xff]  ;;  %v992_v42 = vld [vmem:[%s1953_s6 + $0x38] sm:$0xff]  ;;  %p1458_p3 = pnand %p1457_p2, %p1453_p13 }
  0x1f   : > { %1295 = vmatmul.msk.bf16.vlgmr.msra.gmra.mxu0 %vm493_vm1, %v1366_v14  ;;  %1303 = vmatmul.msk.bf16.vlgmr.msra.gmra.mxu1 %vm493_vm1, %v1366_v14  ;;  %v989_v43 = vld [vmem:[%s1953_s6 + $0x20] sm:$0xff]  ;;  %v1371_v44 = vld [vmem:[%s1948_s1 + $0x28] sm:$0xff]  ;;  %v987_v46 = vld [vmem:[%s1953_s6 + $0x10] sm:$0xff] }
  0x20   : > { %v696_v45 = vld [vmem:[%s1951_s4 + $0x48] sm:$0xff]  ;;  %v988_v47 = vld [vmem:[%s1953_s6 + $0x18] sm:$0xff]  ;;  %v691_v48 = vld [vmem:[%s1951_s4 + $0x20] sm:$0xff] }
  0x21   : > { %v986_v49 = vld [vmem:[%s1953_s6 + $0x8] sm:$0xff]  ;;  %v1140_v50 = vld [vmem:[%s1955_s8] sm:$0xff]  ;;  %v1372_v51 = vld [vmem:[%s1948_s1 + $0x30] sm:$0xff] }
  0x22   : > { %v690_v52 = vld [vmem:[%s1951_s4 + $0x18] sm:$0xff]  ;;  %v991_v55 = vld [vmem:[%s1953_s6 + $0x30] sm:$0xff]  ;;  %v990_v60 = vld [vmem:[%s1953_s6 + $0x28] sm:$0xff] }
  0x23   : > { %v1373_v59 = vld [vmem:[%s1948_s1 + $0x38] sm:$0xff]  ;;  %v985_v0 = vld [vmem:[%s1953_s6] sm:$0xff] }
  0x25   : > { %410 = vperm.xlu0 %1427, %v360_v15  }
  0x26   : > { %415 = vperm.xlu1 %1428, %v361_v16   ;;  %400 = vperm.xlu2 %1429, %v358_v17  }
  0x2d   : > { %405 = vperm.xlu0 %1427, %v359_v18  }
  0x2e   : > { %395 = vperm.xlu2 %1429, %v357_v19   ;;  %390 = vperm.xlu1 %1428, %v356_v20  }
  0x2f   : > { %1296 = vmatmul.msk.bf16.gmra.mxu0 %vm493_vm1, %v1367_v21  ;;  %1304 = vmatmul.msk.bf16.gmra.mxu1 %vm493_vm1, %v1367_v21 }
  0x35   : > { %380 = vperm.xlu0 %1427, %v354_v22  }
  0x36   : > { %385 = vperm.xlu1 %1428, %v355_v23   ;;  %370 = vperm.xlu2 %1429, %v352_v24  }
  0x3d   : > { %375 = vperm.xlu0 %1427, %v353_v25  }
  0x3e   : > { %775 = vperm.xlu1 %1428, %v701_v26   ;;  %780 = vperm.xlu2 %1429, %v702_v35  }
  0x3f   : > { %1297 = vmatmul.msk.bf16.gmra.mxu0 %vm493_vm1, %v1368_v27  ;;  %1305 = vmatmul.msk.bf16.gmra.mxu1 %vm493_vm1, %v1368_v27 }
  0x45   : > { %765 = vperm.xlu0 %1427, %v699_v28  }
  0x46   : > { %770 = vperm.xlu1 %1428, %v700_v29   ;;  %755 = vperm.xlu2 %1429, %v697_v41  }
  0x4d   : > { %760 = vperm.xlu0 %1427, %v698_v30  }
  0x4e   : > { %745 = vperm.xlu1 %1428, %v695_v31   ;;  %750 = vperm.xlu2 %1429, %v696_v45  }
  0x4f   : > { %1298 = vmatmul.msk.bf16.gmra.mxu0 %vm493_vm1, %v1369_v32  ;;  %1306 = vmatmul.msk.bf16.gmra.mxu1 %vm493_vm1, %v1369_v32 }
  0x55   : > { %735 = vperm.xlu0 %1427, %v693_v33  }
  0x56   : > { %740 = vperm.xlu1 %1428, %v694_v34   ;;  %725 = vperm.xlu2 %1429, %v691_v48  }
  0x5d   : > { %730 = vperm.xlu0 %1427, %v692_v36  }
  0x5e   : > { %715 = vperm.xlu1 %1428, %v689_v37   ;;  %720 = vperm.xlu2 %1429, %v690_v52  }
  0x5f   : > { %1299 = vmatmul.msk.bf16.gmra.mxu0 %vm493_vm1, %v1370_v38  ;;  %1307 = vmatmul.msk.bf16.gmra.mxu1 %vm493_vm1, %v1370_v38 }
  0x65   : > { %705 = vperm.xlu0 %1427, %v687_v39  }
  0x66   : > { %710 = vperm.xlu1 %1428, %v688_v40   ;;  %1025 = vperm.xlu2 %1429, %v991_v55  }
  0x6d   : > { %1030 = vperm.xlu0 %1427, %v992_v42  }
  0x6e   : > { %1015 = vperm.xlu1 %1428, %v989_v43   ;;  %1020 = vperm.xlu2 %1429, %v990_v60  }
  0x6f   : > { %1300 = vmatmul.msk.bf16.gmra.mxu0 %vm493_vm1, %v1371_v44  ;;  %1308 = vmatmul.msk.bf16.gmra.mxu1 %vm493_vm1, %v1371_v44 }
  0x70   : > { %v1748_v53 = vpop.permute.xlu2 %420 }
  0x75   : > { %1005 = vperm.xlu0 %1427, %v987_v46  }
  0x76   : > { %1010 = vperm.xlu1 %1428, %v988_v47   ;;  %995 = vperm.xlu2 %1429, %v985_v0  }
  0x78   : > { %v1757_v56 = vpop.permute.xlu2 %425 }
  0x7d   : > { %1000 = vperm.xlu0 %1427, %v986_v49  }
  0x7e   : > { %1143 = vperm.xlu1 %1428, %v1140_v50  }
  0x7f   : > { %1301 = vmatmul.msk.bf16.gmra.mxu0 %vm493_vm1, %v1372_v51  ;;  %1309 = vmatmul.msk.bf16.gmra.mxu1 %vm493_vm1, %v1372_v51 }
  0x80   : > { %v401_v61 = vpop.permute.xlu2 %400 }
  0x87   : > { %v1752_v54 = vpop.permute.xlu0 %440 }
  0x88   : > { %v1759_v57 = vpop.permute.xlu1 %430  ;;  %v396_v4 = vpop.permute.xlu2 %395 }
  0x8f   : > { %v1761_v58 = vpop.permute.xlu0 %445  ;;  %1302 = vmatmul.msk.bf16.gmra.mxu0 %vm493_vm1, %v1373_v59  ;;  %1310 = vmatmul.msk.bf16.gmra.mxu1 %vm493_vm1, %v1373_v59 }
  0x90   : > { %v1773_v63 = vpop.permute.xlu1 %435  ;;  %v371_v9 = vpop.permute.xlu2 %370 }
  0x97   : > { %v1771_v62 = vpop.permute.xlu0 %410 }
  0x98   : > { %v1778_v5 = vpop.permute.xlu1 %415 }
  0x9c   : > { %v534_v2 = vpop.f32.mrf.mxu0  ;;  %v583_v3 = vpop.f32.mrf.mxu1 }
  0x9d   : > { %v535_v11 = vadd.f32 %v534_v2, %v371_v9  ;;  %v584_v12 = vadd.f32 %v583_v3, %v371_v9 }
  0x9f   : > { %v406_v1 = vpop.permute.xlu0 %405  ;;  %v623_v18 = vmax.f32 %v535_v11, 0.0  ;;  %v624_v19 = vmax.f32 %v584_v12, 0.0 }
  0xa0   : > { %v391_v10 = vpop.permute.xlu1 %390 }
  0xa4   : > { %v536_v7 = vpop.f32.mrf.mxu0  ;;  %v585_v8 = vpop.f32.mrf.mxu1 }
  0xa7   : > { %v381_v6 = vpop.permute.xlu0 %380 }
  0xa8   : > { %v386_v24 = vpop.permute.xlu1 %385 }
  0xac   : > { %v539_v16 = vpop.f32.mrf.mxu0  ;;  %v588_v17 = vpop.f32.mrf.mxu1 }
  0xad   : > { %v540_v25 = vadd.f32 %v539_v16, %v381_v6  ;;  %v589_v26 = vadd.f32 %v588_v17, %v381_v6 }
  0xaf   : > { %v376_v13 = vpop.permute.xlu0 %375  ;;  %v627_v31 = vmax.f32 %v540_v25, 0.0  ;;  %v628_v32 = vmax.f32 %v589_v26, 0.0 }
  0xb0   : > { %v537_v14 = vadd.f32 %v536_v7, %v376_v13  ;;  %v586_v15 = vadd.f32 %v585_v8, %v376_v13 }
  0xb2   : > { %v625_v20 = vmax.f32 %v537_v14, 0.0  ;;  %v626_v21 = vmax.f32 %v586_v15, 0.0 }
  0xb4   : > { %v1780_v22 = vpack.c.bf16 %v625_v20, %v623_v18  ;;  %v1782_v23 = vpack.c.bf16 %v626_v21, %v624_v19  ;;  %v541_v27 = vpop.f32.mrf.mxu0  ;;  %v590_v28 = vpop.f32.mrf.mxu1 }
  0xb5   : > { %v542_v29 = vadd.f32 %v541_v27, %v386_v24  ;;  %v591_v30 = vadd.f32 %v590_v28, %v386_v24 }
  0xb7   : > { %v629_v33 = vmax.f32 %v542_v29, 0.0  ;;  %v630_v34 = vmax.f32 %v591_v30, 0.0 }
  0xb9   : > { %v1784_v35 = vpack.c.bf16 %v629_v33, %v627_v31  ;;  %v1786_v36 = vpack.c.bf16 %v630_v34, %v628_v32 }
  0xbc   : > { %v544_v37 = vpop.f32.mrf.mxu0  ;;  %v593_v38 = vpop.f32.mrf.mxu1 }
  0xbd   : > { %v545_v39 = vadd.f32 %v544_v37, %v391_v10  ;;  %v594_v40 = vadd.f32 %v593_v38, %v391_v10 }
  0xbf   : > { %v631_v45 = vmax.f32 %v545_v39, 0.0  ;;  %v632_v46 = vmax.f32 %v594_v40, 0.0 }
  0xc4   : > { %v546_v41 = vpop.f32.mrf.mxu0  ;;  %v595_v42 = vpop.f32.mrf.mxu1 }
  0xc5   : > { %v547_v43 = vadd.f32 %v546_v41, %v396_v4  ;;  %v596_v44 = vadd.f32 %v595_v42, %v396_v4 }
  0xc7   : > { %v633_v47 = vmax.f32 %v547_v43, 0.0  ;;  %v634_v48 = vmax.f32 %v596_v44, 0.0 }
  0xc9   : > { %v1788_v49 = vpack.c.bf16 %v633_v47, %v631_v45  ;;  %v1790_v50 = vpack.c.bf16 %v634_v48, %v632_v46 }
  0xcc   : > { %v549_v51 = vpop.f32.mrf.mxu0  ;;  %v598_v52 = vpop.f32.mrf.mxu1 }
  0xcd   : > { %v550_v55 = vadd.f32 %v549_v51, %v401_v61  ;;  %v599_v59 = vadd.f32 %v598_v52, %v401_v61 }
  0xcf   : > { %v635_v6 = vmax.f32 %v550_v55, 0.0  ;;  %v636_v7 = vmax.f32 %v599_v59, 0.0 }
  0xd4   : > { %v551_v60 = vpop.f32.mrf.mxu0  ;;  %v600_v0 = vpop.f32.mrf.mxu1 }
  0xd5   : > { %v552_v2 = vadd.f32 %v551_v60, %v406_v1  ;;  %v601_v3 = vadd.f32 %v600_v0, %v406_v1 }
  0xd7   : > { %v637_v8 = vmax.f32 %v552_v2, 0.0  ;;  %v638_v4 = vmax.f32 %v601_v3, 0.0 }
  0xd9   : > { %v1792_v9 = vpack.c.bf16 %v637_v8, %v635_v6  ;;  %v1794_v10 = vpack.c.bf16 %v638_v4, %v636_v7 }
  0xdc   : > { %v554_v11 = vpop.f32.mrf.mxu0  ;;  %v603_v12 = vpop.f32.mrf.mxu1 }
  0xdd   : > { %v555_v59 = vadd.f32 %v554_v11, %v1771_v62  ;;  %v604_v60 = vadd.f32 %v603_v12, %v1771_v62  ;;  %v1374_v62 = vld [vmem:[%s1950_s3] sm:$0xff] }
  0xdf   : > { %v639_v8 = vmax.f32 %v555_v59, 0.0  ;;  %v640_v4 = vmax.f32 %v604_v60, 0.0 }
  0xe4   : > { %v556_v13 = vpop.f32.mrf.mxu0  ;;  %v605_v14 = vpop.f32.mrf.mxu1 }
  0xe5   : > { %v606_v48 = vadd.f32 %v605_v14, %v1778_v5 }
  0xe7   : > { %v642_v3 = vmax.f32 %v606_v48, 0.0 }
  0xec   : > { %v559_v15 = vpop.f32.mrf.mxu0  ;;  %v608_v16 = vpop.f32.mrf.mxu1 }
  0xed   : > { %v560_v45 = vadd.f32 %v559_v15, %v1748_v53  ;;  %v1381_v15 = vld [vmem:[%s1950_s3 + $0x38] sm:$0xff] }
  0xef   : > { %v643_v0 = vmax.f32 %v560_v45, 0.0 }
  0xf4   : > { %v561_v17 = vpop.f32.mrf.mxu0  ;;  %v610_v61 = vpop.f32.mrf.mxu1 }
  0xf5   : > { %v611_v41 = vadd.f32 %v610_v61, %v1757_v56 }
  0xf7   : > { %v646_v52 = vmax.f32 %v611_v41, 0.0 }
  0xfc   : > { %v564_v18 = vpop.f32.mrf.mxu0  ;;  %v613_v19 = vpop.f32.mrf.mxu1 }
  0xfd   : > { %v565_v33 = vadd.f32 %v564_v18, %v1759_v57  ;;  %v614_v34 = vadd.f32 %v613_v19, %v1759_v57  ;;  %v557_v57 = vadd.f32 %v556_v13, %v1778_v5  ;;  %v664_v13 = vpack.c.bf16 %v642_v3, %v640_v4 }
  0xff   : > { %v647_v46 = vmax.f32 %v565_v33, 0.0  ;;  %v648_v47 = vmax.f32 %v614_v34, 0.0 }
 0x104   : > { %v566_v20 = vpop.f32.mrf.mxu0  ;;  %v615_v1 = vpop.f32.mrf.mxu1 }
 0x105   : > { %v567_v29 = vadd.f32 %v566_v20, %v1773_v63  ;;  %v616_v30 = vadd.f32 %v615_v1, %v1773_v63 }
 0x107   : > { %v649_v42 = vmax.f32 %v567_v29, 0.0  ;;  %v650_v43 = vmax.f32 %v616_v30, 0.0 }
 0x109   : > { %v667_v55 = vpack.c.bf16 %v649_v42, %v647_v46 }
 0x10c   : > { %v569_v21 = vpop.f32.mrf.mxu0  ;;  %v618_v24 = vpop.f32.mrf.mxu1 }
 0x10d   : > { %v570_v25 = vadd.f32 %v569_v21, %v1752_v54  ;;  %v619_v26 = vadd.f32 %v618_v24, %v1752_v54  ;;  %v562_v54 = vadd.f32 %v561_v17, %v1757_v56  ;;  %v668_v56 = vpack.c.bf16 %v650_v43, %v648_v47 }
 0x10f   : > { %v651_v37 = vmax.f32 %v570_v25, 0.0  ;;  %v652_v38 = vmax.f32 %v619_v26, 0.0  ;;  %v645_v51 = vmax.f32 %v562_v54, 0.0 }
 0x111   : > { %v665_v6 = vpack.c.bf16 %v645_v51, %v643_v0 }
 0x114   : > { %v571_v27 = vpop.f32.mrf.mxu0  ;;  %v620_v28 = vpop.f32.mrf.mxu1 }
 0x115   : > { %v572_v31 = vadd.f32 %v571_v27, %v1761_v58  ;;  %v621_v32 = vadd.f32 %v620_v28, %v1761_v58  ;;  %v609_v58 = vadd.f32 %v608_v16, %v1748_v53  ;;  %v641_v53 = vmax.f32 %v557_v57, 0.0  ;;  %v1854_v16 = vpop.permute.xlu2 %780 }
 0x117   : > { %v653_v39 = vmax.f32 %v572_v31, 0.0  ;;  %v654_v40 = vmax.f32 %v621_v32, 0.0  ;;  %v644_v2 = vmax.f32 %v609_v58, 0.0  ;;  %v663_v5 = vpack.c.bf16 %v641_v53, %v639_v8 }
 0x119   : > { %v669_v44 = vpack.c.bf16 %v653_v39, %v651_v37  ;;  %v670_v63 = vpack.c.bf16 %v654_v40, %v652_v38  ;;  %v666_v7 = vpack.c.bf16 %v646_v52, %v644_v2 }
 0x11b   : > { %831 = vmatpush.bf16.msra.mxu2 %v669_v44  ;;  %880 = vmatpush.bf16.msra.mxu3 %v670_v63 }
 0x11d   : > { %v1856_v18 = vpop.permute.xlu2 %755 }
 0x11f   : > { %832 = vmatpush.bf16.msra.mxu2 %v667_v55  ;;  %881 = vmatpush.bf16.msra.mxu3 %v668_v56 }
 0x123   : > { %833 = vmatpush.bf16.msra.mxu2 %v665_v6  ;;  %882 = vmatpush.bf16.msra.mxu3 %v666_v7 }
 0x125   : > { %v1858_v24 = vpop.permute.xlu2 %750 }
 0x127   : > { %834 = vmatpush.bf16.msra.mxu2 %v663_v5  ;;  %883 = vmatpush.bf16.msra.mxu3 %v664_v13 }
 0x12b   : > { %835 = vmatpush.bf16.msra.mxu2 %v1792_v9  ;;  %884 = vmatpush.bf16.msra.mxu3 %v1794_v10  ;;  %v1380_v9 = vld [vmem:[%s1950_s3 + $0x30] sm:$0xff]  ;;  %v1843_v10 = vpop.permute.xlu0 %765 }
 0x12d   : > { %v726_v39 = vpop.permute.xlu2 %725 }
 0x12f   : > { %836 = vmatpush.bf16.msra.mxu2 %v1788_v49  ;;  %885 = vmatpush.bf16.msra.mxu3 %v1790_v50  ;;  %v1375_v49 = vld [vmem:[%s1950_s3 + $0x8] sm:$0xff]  ;;  %v1838_v50 = vpop.permute.xlu1 %775 }
 0x133   : > { %837 = vmatpush.bf16.msra.mxu2 %v1784_v35  ;;  %886 = vmatpush.bf16.msra.mxu3 %v1786_v36  ;;  %v1376_v35 = vld [vmem:[%s1950_s3 + $0x10] sm:$0xff]  ;;  %v1379_v36 = vld [vmem:[%s1950_s3 + $0x28] sm:$0xff]  ;;  %v1847_v12 = vpop.permute.xlu0 %760 }
 0x135   : > { %v721_v43 = vpop.permute.xlu2 %720 }
 0x137   : > { %838 = vmatpush.bf16.msra.mxu2 %v1780_v22  ;;  %887 = vmatpush.bf16.msra.mxu3 %v1782_v23  ;;  %v1377_v22 = vld [vmem:[%s1950_s3 + $0x18] sm:$0xff]  ;;  %v1378_v23 = vld [vmem:[%s1950_s3 + $0x20] sm:$0xff]  ;;  %v1845_v11 = vpop.permute.xlu1 %770 }
 0x13a   : > { %839 = vmatmul.bf16.vlgmr.msra.gmra.mxu2 %v1374_v62  ;;  %888 = vmatmul.bf16.vlgmr.msra.gmra.mxu3 %v1374_v62 }
 0x13b   : > { %v736_v17 = vpop.permute.xlu0 %735 }
 0x13f   : > { %v1849_v14 = vpop.permute.xlu1 %745 }
 0x143   : > { %v731_v19 = vpop.permute.xlu0 %730 }
 0x147   : > { %v741_v61 = vpop.permute.xlu1 %740 }
 0x14a   : > { %844 = vmatmul.bf16.gmra.mxu2 %v1375_v49  ;;  %893 = vmatmul.bf16.gmra.mxu3 %v1375_v49 }
 0x14b   : > { %v706_v25 = vpop.permute.xlu0 %705 }
 0x14f   : > { %v716_v20 = vpop.permute.xlu1 %715 }
 0x157   : > { %v711_v26 = vpop.permute.xlu1 %710 }
 0x15a   : > { %849 = vmatmul.bf16.gmra.mxu2 %v1376_v35  ;;  %898 = vmatmul.bf16.gmra.mxu3 %v1376_v35 }
 0x16a   : > { %854 = vmatmul.bf16.gmra.mxu2 %v1377_v22  ;;  %903 = vmatmul.bf16.gmra.mxu3 %v1377_v22 }
 0x17a   : > { %859 = vmatmul.bf16.gmra.mxu2 %v1378_v23  ;;  %908 = vmatmul.bf16.gmra.mxu3 %v1378_v23 }
 0x18a   : > { %864 = vmatmul.bf16.gmra.mxu2 %v1379_v36  ;;  %913 = vmatmul.bf16.gmra.mxu3 %v1379_v36 }
 0x19a   : > { %869 = vmatmul.bf16.gmra.mxu2 %v1380_v9  ;;  %918 = vmatmul.bf16.gmra.mxu3 %v1380_v9 }
 0x1aa   : > { %874 = vmatmul.bf16.gmra.mxu2 %v1381_v15  ;;  %923 = vmatmul.bf16.gmra.mxu3 %v1381_v15 }
 0x1bd   : > { %v840_v1 = vpop.f32.mrf.mxu2  ;;  %v889_v21 = vpop.f32.mrf.mxu3 }
 0x1be   : > { %v841_v27 = vadd.f32 %v840_v1, %v706_v25  ;;  %v890_v28 = vadd.f32 %v889_v21, %v706_v25 }
 0x1c0   : > { %v929_v33 = vmax.f32 %v841_v27, 0.0  ;;  %v930_v34 = vmax.f32 %v890_v28, 0.0 }
 0x1c5   : > { %v842_v29 = vpop.f32.mrf.mxu2  ;;  %v891_v30 = vpop.f32.mrf.mxu3 }
 0x1c6   : > { %v843_v31 = vadd.f32 %v842_v29, %v711_v26  ;;  %v892_v32 = vadd.f32 %v891_v30, %v711_v26 }
 0x1c8   : > { %v931_v37 = vmax.f32 %v843_v31, 0.0  ;;  %v932_v38 = vmax.f32 %v892_v32, 0.0 }
 0x1ca   : > { %v1860_v40 = vpack.c.bf16 %v931_v37, %v929_v33  ;;  %v1862_v54 = vpack.c.bf16 %v932_v38, %v930_v34 }
 0x1cd   : > { %v845_v41 = vpop.f32.mrf.mxu2  ;;  %v894_v42 = vpop.f32.mrf.mxu3 }
 0x1ce   : > { %v846_v44 = vadd.f32 %v845_v41, %v716_v20  ;;  %v895_v63 = vadd.f32 %v894_v42, %v716_v20 }
 0x1d0   : > { %v933_v57 = vmax.f32 %v846_v44, 0.0  ;;  %v934_v48 = vmax.f32 %v895_v63, 0.0 }
 0x1d5   : > { %v847_v45 = vpop.f32.mrf.mxu2  ;;  %v896_v58 = vpop.f32.mrf.mxu3 }
 0x1d6   : > { %v848_v46 = vadd.f32 %v847_v45, %v721_v43  ;;  %v897_v47 = vadd.f32 %v896_v58, %v721_v43 }
 0x1d8   : > { %v935_v51 = vmax.f32 %v848_v46, 0.0  ;;  %v936_v52 = vmax.f32 %v897_v47, 0.0 }
 0x1da   : > { %v1864_v55 = vpack.c.bf16 %v935_v51, %v933_v57  ;;  %v1866_v56 = vpack.c.bf16 %v936_v52, %v934_v48 }
 0x1dd   : > { %v850_v59 = vpop.f32.mrf.mxu2  ;;  %v899_v60 = vpop.f32.mrf.mxu3 }
 0x1de   : > { %v851_v0 = vadd.f32 %v850_v59, %v726_v39  ;;  %v900_v2 = vadd.f32 %v899_v60, %v726_v39 }
 0x1e0   : > { %v937_v8 = vmax.f32 %v851_v0, 0.0  ;;  %v938_v4 = vmax.f32 %v900_v2, 0.0 }
 0x1e5   : > { %v852_v53 = vpop.f32.mrf.mxu2  ;;  %v901_v3 = vpop.f32.mrf.mxu3 }
 0x1e6   : > { %v853_v6 = vadd.f32 %v852_v53, %v731_v19  ;;  %v902_v7 = vadd.f32 %v901_v3, %v731_v19 }
 0x1e8   : > { %v939_v5 = vmax.f32 %v853_v6, 0.0  ;;  %v940_v13 = vmax.f32 %v902_v7, 0.0 }
 0x1ea   : > { %v1868_v62 = vpack.c.bf16 %v939_v5, %v937_v8  ;;  %v1870_v49 = vpack.c.bf16 %v940_v13, %v938_v4 }
 0x1ed   : > { %v855_v35 = vpop.f32.mrf.mxu2  ;;  %v904_v22 = vpop.f32.mrf.mxu3 }
 0x1ee   : > { %v856_v23 = vadd.f32 %v855_v35, %v736_v17  ;;  %v905_v36 = vadd.f32 %v904_v22, %v736_v17 }
 0x1f0   : > { %v941_v21 = vmax.f32 %v856_v23, 0.0  ;;  %v942_v25 = vmax.f32 %v905_v36, 0.0 }
 0x1f5   : > { %v857_v9 = vpop.f32.mrf.mxu2  ;;  %v906_v15 = vpop.f32.mrf.mxu3 }
 0x1f6   : > { %v858_v20 = vadd.f32 %v857_v9, %v741_v61  ;;  %v907_v1 = vadd.f32 %v906_v15, %v741_v61 }
 0x1f8   : > { %v943_v26 = vmax.f32 %v858_v20, 0.0  ;;  %v944_v19 = vmax.f32 %v907_v1, 0.0 }
 0x1fa   : > { %v1872_v27 = vpack.c.bf16 %v943_v26, %v941_v21  ;;  %v1874_v28 = vpack.c.bf16 %v944_v19, %v942_v25 }
 0x1fd   : > { %v860_v29 = vpop.f32.mrf.mxu2  ;;  %v909_v30 = vpop.f32.mrf.mxu3 }
 0x1fe   : > { %v861_v36 = vadd.f32 %v860_v29, %v1849_v14  ;;  %v910_v9 = vadd.f32 %v909_v30, %v1849_v14  ;;  %v1382_v14 = vld [vmem:[%s1952_s5] sm:$0xff] }
 0x200   : > { %v945_v26 = vmax.f32 %v861_v36, 0.0  ;;  %v946_v19 = vmax.f32 %v910_v9, 0.0 }
 0x205   : > { %v862_v31 = vpop.f32.mrf.mxu2  ;;  %v911_v32 = vpop.f32.mrf.mxu3 }
 0x206   : > { %v912_v13 = vadd.f32 %v911_v32, %v1858_v24 }
 0x208   : > { %v948_v1 = vmax.f32 %v912_v13, 0.0 }
 0x20d   : > { %v865_v33 = vpop.f32.mrf.mxu2  ;;  %v914_v34 = vpop.f32.mrf.mxu3 }
 0x20e   : > { %v866_v8 = vadd.f32 %v865_v33, %v1856_v18 }
 0x210   : > { %v949_v15 = vmax.f32 %v866_v8, 0.0 }
 0x215   : > { %v867_v37 = vpop.f32.mrf.mxu2  ;;  %v916_v17 = vpop.f32.mrf.mxu3 }
 0x216   : > { %v917_v53 = vadd.f32 %v916_v17, %v1847_v12 }
 0x218   : > { %v952_v22 = vmax.f32 %v917_v53, 0.0 }
 0x21d   : > { %v870_v38 = vpop.f32.mrf.mxu2  ;;  %v919_v39 = vpop.f32.mrf.mxu3 }
 0x21e   : > { %v871_v51 = vadd.f32 %v870_v38, %v1843_v10  ;;  %v920_v52 = vadd.f32 %v919_v39, %v1843_v10  ;;  %v863_v10 = vadd.f32 %v862_v31, %v1858_v24  ;;  %v970_v31 = vpack.c.bf16 %v948_v1, %v946_v19  ;;  %v1031_v38 = vpop.permute.xlu0 %1030  ;;  %v1026_v39 = vpop.permute.xlu2 %1025 }
 0x220   : > { %v953_v4 = vmax.f32 %v871_v51, 0.0  ;;  %v954_v5 = vmax.f32 %v920_v52, 0.0 }
 0x225   : > { %v872_v41 = vpop.f32.mrf.mxu2  ;;  %v921_v61 = vpop.f32.mrf.mxu3 }
 0x226   : > { %v873_v46 = vadd.f32 %v872_v41, %v1845_v11  ;;  %v922_v47 = vadd.f32 %v921_v61, %v1845_v11 }
 0x228   : > { %v955_v3 = vmax.f32 %v873_v46, 0.0  ;;  %v956_v6 = vmax.f32 %v922_v47, 0.0 }
 0x22a   : > { %v973_v23 = vpack.c.bf16 %v955_v3, %v953_v4 }
 0x22d   : > { %v875_v42 = vpop.f32.mrf.mxu2  ;;  %v924_v43 = vpop.f32.mrf.mxu3 }
 0x22e   : > { %v876_v44 = vadd.f32 %v875_v42, %v1838_v50  ;;  %v925_v63 = vadd.f32 %v924_v43, %v1838_v50  ;;  %v868_v50 = vadd.f32 %v867_v37, %v1847_v12  ;;  %v974_v12 = vpack.c.bf16 %v956_v6, %v954_v5  ;;  %v1016_v42 = vpop.permute.xlu1 %1015  ;;  %v1006_v43 = vpop.permute.xlu0 %1005 }
 0x230   : > { %v957_v59 = vmax.f32 %v876_v44, 0.0  ;;  %v958_v60 = vmax.f32 %v925_v63, 0.0  ;;  %v951_v35 = vmax.f32 %v868_v50, 0.0  ;;  %v1021_v44 = vpop.permute.xlu2 %1020 }
 0x232   : > { %v971_v21 = vpack.c.bf16 %v951_v35, %v949_v15 }
 0x235   : > { %v877_v45 = vpop.f32.mrf.mxu2  ;;  %v926_v58 = vpop.f32.mrf.mxu3 }
 0x236   : > { %v878_v57 = vadd.f32 %v877_v45, %v1854_v16  ;;  %v927_v48 = vadd.f32 %v926_v58, %v1854_v16  ;;  %v915_v16 = vadd.f32 %v914_v34, %v1856_v18  ;;  %v947_v18 = vmax.f32 %v863_v10, 0.0  ;;  %v1001_v4 = vpop.permute.xlu0 %1000 }
 0x238   : > { %v959_v0 = vmax.f32 %v878_v57, 0.0  ;;  %v960_v2 = vmax.f32 %v927_v48, 0.0  ;;  %v950_v20 = vmax.f32 %v915_v16, 0.0  ;;  %v969_v24 = vpack.c.bf16 %v947_v18, %v945_v26 }
 0x23a   : > { %v975_v7 = vpack.c.bf16 %v959_v0, %v957_v59  ;;  %v976_v11 = vpack.c.bf16 %v960_v2, %v958_v60  ;;  %v972_v25 = vpack.c.bf16 %v952_v22, %v950_v20  ;;  %v1011_v60 = vpop.permute.xlu1 %1010  ;;  %v996_v20 = vpop.permute.xlu2 %995 }
 0x23c   : > { %1057 = vmatpush.bf16.msrb.mxu0 %v975_v7  ;;  %1086 = vmatpush.bf16.msrb.mxu1 %v976_v11 }
 0x240   : > { %1058 = vmatpush.bf16.msrb.mxu0 %v973_v23  ;;  %1087 = vmatpush.bf16.msrb.mxu1 %v974_v12 }
 0x244   : > { %1059 = vmatpush.bf16.msrb.mxu0 %v971_v21  ;;  %1088 = vmatpush.bf16.msrb.mxu1 %v972_v25 }
 0x248   : > { %1060 = vmatpush.bf16.msrb.mxu0 %v969_v24  ;;  %1089 = vmatpush.bf16.msrb.mxu1 %v970_v31 }
 0x24c   : > { %1061 = vmatpush.bf16.msrb.mxu0 %v1872_v27  ;;  %1090 = vmatpush.bf16.msrb.mxu1 %v1874_v28 }
 0x250   : > { %1062 = vmatpush.bf16.msrb.mxu0 %v1868_v62  ;;  %1091 = vmatpush.bf16.msrb.mxu1 %v1870_v49  ;;  %v1383_v62 = vld [vmem:[%s1952_s5 + $0x8] sm:$0xff] }
 0x254   : > { %1063 = vmatpush.bf16.msrb.mxu0 %v1864_v55  ;;  %1092 = vmatpush.bf16.msrb.mxu1 %v1866_v56  ;;  %v1384_v55 = vld [vmem:[%s1952_s5 + $0x10] sm:$0xff] }
 0x258   : > { %1064 = vmatpush.bf16.msrb.mxu0 %v1860_v40  ;;  %1093 = vmatpush.bf16.msrb.mxu1 %v1862_v54  ;;  %v1385_v40 = vld [vmem:[%s1952_s5 + $0x18] sm:$0xff] }
 0x25b   : > { %1065 = vmatmul.bf16.vlgmr.msrb.gmra.mxu0 %v1382_v14  ;;  %1094 = vmatmul.bf16.vlgmr.msrb.gmra.mxu1 %v1382_v14 }
 0x26b   : > { %1070 = vmatmul.bf16.gmra.mxu0 %v1383_v62  ;;  %1099 = vmatmul.bf16.gmra.mxu1 %v1383_v62 }
 0x27b   : > { %1075 = vmatmul.bf16.gmra.mxu0 %v1384_v55  ;;  %1104 = vmatmul.bf16.gmra.mxu1 %v1384_v55 }
 0x28b   : > { %1080 = vmatmul.bf16.gmra.mxu0 %v1385_v40  ;;  %1109 = vmatmul.bf16.gmra.mxu1 %v1385_v40 }
 0x2d8   : > { %v1066_v54 = vpop.f32.mrf.mxu0  ;;  %v1095_v56 = vpop.f32.mrf.mxu1 }
 0x2d9   : > { %v1067_v18 = vadd.f32 %v1066_v54, %v996_v20  ;;  %v1096_v1 = vadd.f32 %v1095_v56, %v996_v20  ;;  %v1139_v54 = vld [vmem:[%s1954_s7] sm:$0xf]  ;;  %v1144_v56 = vpop.permute.xlu1 %1143 }
 0x2db   : > { %v1115_v14 = vmax.f32 %v1067_v18, 0.0  ;;  %v1116_v62 = vmax.f32 %v1096_v1, 0.0 }
 0x2e0   : > { %v1068_v49 = vpop.f32.mrf.mxu0  ;;  %v1097_v27 = vpop.f32.mrf.mxu1 }
 0x2e1   : > { %v1069_v22 = vadd.f32 %v1068_v49, %v1001_v4  ;;  %v1098_v23 = vadd.f32 %v1097_v27, %v1001_v4 }
 0x2e3   : > { %v1117_v26 = vmax.f32 %v1069_v22, 0.0  ;;  %v1118_v19 = vmax.f32 %v1098_v23, 0.0 }
 0x2e5   : > { %v1131_v55 = vpack.c.bf16 %v1117_v26, %v1115_v14  ;;  %v1132_v40 = vpack.c.bf16 %v1118_v19, %v1116_v62 }
 0x2e8   : > { %v1071_v28 = vpop.f32.mrf.mxu0  ;;  %v1100_v29 = vpop.f32.mrf.mxu1 }
 0x2e9   : > { %v1072_v5 = vadd.f32 %v1071_v28, %v1006_v43  ;;  %v1101_v10 = vadd.f32 %v1100_v29, %v1006_v43 }
 0x2eb   : > { %v1119_v21 = vmax.f32 %v1072_v5, 0.0  ;;  %v1120_v25 = vmax.f32 %v1101_v10, 0.0 }
 0x2f0   : > { %v1073_v30 = vpop.f32.mrf.mxu0  ;;  %v1102_v32 = vpop.f32.mrf.mxu1 }
 0x2f1   : > { %v1074_v3 = vadd.f32 %v1073_v30, %v1011_v60  ;;  %v1103_v6 = vadd.f32 %v1102_v32, %v1011_v60 }
 0x2f3   : > { %v1121_v12 = vmax.f32 %v1074_v3, 0.0  ;;  %v1122_v36 = vmax.f32 %v1103_v6, 0.0 }
 0x2f5   : > { %v1133_v24 = vpack.c.bf16 %v1121_v12, %v1119_v21  ;;  %v1134_v31 = vpack.c.bf16 %v1122_v36, %v1120_v25 }
 0x2f8   : > { %v1076_v33 = vpop.f32.mrf.mxu0  ;;  %v1105_v34 = vpop.f32.mrf.mxu1 }
 0x2f9   : > { %v1077_v52 = vadd.f32 %v1076_v33, %v1016_v42  ;;  %v1106_v59 = vadd.f32 %v1105_v34, %v1016_v42 }
 0x2fb   : > { %v1123_v13 = vmax.f32 %v1077_v52, 0.0  ;;  %v1124_v35 = vmax.f32 %v1106_v59, 0.0 }
 0x300   : > { %v1078_v37 = vpop.f32.mrf.mxu0  ;;  %v1107_v17 = vpop.f32.mrf.mxu1 }
 0x301   : > { %v1079_v47 = vadd.f32 %v1078_v37, %v1021_v44  ;;  %v1108_v57 = vadd.f32 %v1107_v17, %v1021_v44 }
 0x303   : > { %v1125_v7 = vmax.f32 %v1079_v47, 0.0  ;;  %v1126_v11 = vmax.f32 %v1108_v57, 0.0 }
 0x305   : > { %v1135_v9 = vpack.c.bf16 %v1125_v7, %v1123_v13  ;;  %v1136_v15 = vpack.c.bf16 %v1126_v11, %v1124_v35 }
 0x308   : > { %v1081_v41 = vpop.f32.mrf.mxu0  ;;  %v1110_v61 = vpop.f32.mrf.mxu1 }
 0x309   : > { %v1082_v63 = vadd.f32 %v1081_v41, %v1026_v39  ;;  %v1111_v45 = vadd.f32 %v1110_v61, %v1026_v39 }
 0x30b   : > { %v1127_v0 = vmax.f32 %v1082_v63, 0.0  ;;  %v1128_v2 = vmax.f32 %v1111_v45, 0.0 }
 0x310   : > { %v1083_v58 = vpop.f32.mrf.mxu0  ;;  %v1112_v46 = vpop.f32.mrf.mxu1 }
 0x311   : > { %v1084_v48 = vadd.f32 %v1083_v58, %v1031_v38  ;;  %v1113_v51 = vadd.f32 %v1112_v46, %v1031_v38 }
 0x313   : > { %v1129_v50 = vmax.f32 %v1084_v48, 0.0  ;;  %v1130_v53 = vmax.f32 %v1113_v51, 0.0 }
 0x315   : > { %v1137_v8 = vpack.c.bf16 %v1129_v50, %v1127_v0  ;;  %v1138_v16 = vpack.c.bf16 %v1130_v53, %v1128_v2 }
 0x317   : > { %1154 = vmatpush.bf16.msrb.mxu2 %v1137_v8  ;;  %1167 = vmatpush.bf16.msrb.mxu3 %v1138_v16 }
 0x31b   : > { %1155 = vmatpush.bf16.msrb.mxu2 %v1135_v9  ;;  %1168 = vmatpush.bf16.msrb.mxu3 %v1136_v15 }
 0x31f   : > { %1156 = vmatpush.bf16.msrb.mxu2 %v1133_v24  ;;  %1169 = vmatpush.bf16.msrb.mxu3 %v1134_v31 }
 0x323   : > { %1157 = vmatpush.bf16.msrb.mxu2 %v1131_v55  ;;  %1170 = vmatpush.bf16.msrb.mxu3 %v1132_v40 }
 0x326   : > { %1359 = vmatmul.msk.bf16.vlgmr.msrb.gmra.mxu2 %vm1146_vm2, %v1139_v54  ;;  %1360 = vmatmul.msk.bf16.vlgmr.msrb.gmra.mxu3 %vm1146_vm2, %v1139_v54 }
 0x3a9   : > { %v1159_v49 = vpop.f32.mrf.mxu2  ;;  %v1172_v27 = vpop.f32.mrf.mxu3 }
 0x3aa   : > { %v1160_v28 = vadd.f32 %v1159_v49, %v1144_v56  ;;  %v1173_v29 = vadd.f32 %v1172_v27, %v1144_v56 }
 0x3ac   : > { %1430 = vtanh.f32 %v1160_v28 }
 0x3ad   : > { %1432 = vtanh.f32 %v1173_v29 }
 0x3b1   : > { %v1161_v30 = vpop.f32.mrf.mxu2  ;;  %v1174_v32 = vpop.f32.mrf.mxu3 }
 0x3b2   : > { %v1431_v33 = vpop.eup %1430 }
 0x3b3   : > { %v1433_v34 = vpop.eup %1432  ;;  %1178 = vst [vmem:[%s326_s25] sm:$0xff] %v1431_v33 }
 0x3b4   : > { %1179 = vst [vmem:[%s326_s25 + $0x8] sm:$0xff] %v1433_v34 }
 0x3b5   : > { %1461 = shalt.err (!%p1458_p3)
}
 0x3b6   : > { %1387 = dma.vmem_to_hbm [thread:$0]  (%p1587_p5), %s1195_s26, 256, %s1197_s23, %s1181_s13  }
 0x3b7 PF: > { %p1393_p4 = scmp.ge.s32.totalorder %s1496_s12, 2  ;;  %s1208_s14 = sand.u32 1, %s1484_s30  }
 0x3b8   : > { %s1209_s24 = scalar_lea.sflag [#allocation3], %s1208_s14 }
 0x3b9   : > { %p1390_p7 = pnand %p1393_p4, %p1591_p6 }
 0x3bb   : > { %p1391_p8 = pneg %p1390_p7 }
 0x3bd   : > { %1479 = dma.done.wait (%p1391_p8), %s1209_s24, 256  }
 0x3be   : > { %1481 = vsyncadd (%p1391_p8), %s1209_s24, 4294967040  ;;  %p19_p9 = scmp.ge.s32.totalorder %s1574_s15, 4   ;;  %s1959_s30 = smov %s1488_s10 }
 0x3bf   : > { %s1960_s10 = smov %s1492_s11  ;;  %s1961_s11 = smov %s1585_s18 }
 0x3c0   : > { %s1962_s12 = smov %s1574_s15  ;;  %21 = sbr.rel (!%p19_p9) target bundleno = 3 (0x3), region = 91 }
 0x3c5   :  { %1215 = vsyncpa [#allocation3], 1 }
 0x3c6   :  { %1217 = vsyncpa [#allocation3 + $0x1], 1 }

</bundles_post_ra>
